<compile_context>
chip_gen: v5e
topology: v5e:2x2
jax: 0.10.0
libtpu: 0.0.40
codegen_flags: <defaults>
</compile_context>

<pallas_src>
import jax
import jax.numpy as jnp
from jax.experimental import pallas as pl
from jax.experimental.pallas import tpu as pltpu


def _round_up(x: int, m: int) -> int:
    return ((x + m - 1) // m) * m


def _vmem_capacity_bytes() -> int:
    try:
        return int(pltpu.get_tpu_info().vmem_capacity_bytes)
    except Exception:
        return 64 * 1024 * 1024  # conservative fallback (v7x per-TC size)


# --------------------------------------------------------------------------
# Kernels
# --------------------------------------------------------------------------
def _residual_linear_resident_kernel(x_ref, w_ref, b_ref, o_ref):
    # x_ref: (tm, Dp) model dtype; w_ref: (Dp, Dp) bf16, VMEM-resident;
    # b_ref: (1, Dp) f32.  bf16 MXU matmul, f32 accumulate, f32 epilogue.
    x = x_ref[...]
    y = jnp.dot(x.astype(jnp.bfloat16), w_ref[...],
                preferred_element_type=jnp.float32)
    o_ref[...] = (y + b_ref[...] + x.astype(jnp.float32)).astype(o_ref.dtype)


def _residual_linear_ktiled_kernel(xk_ref, w_ref, xfull_ref, b_ref, o_ref,
                                   acc_ref):
    # Grid: (N tiles, K tiles).  K is the reduction axis (last, "arbitrary").
    k = pl.program_id(1)

    @pl.when(k == 0)
    def _():
        acc_ref[...] = jnp.zeros_like(acc_ref)

    acc_ref[...] += jnp.dot(xk_ref[...].astype(jnp.bfloat16), w_ref[...],
                            preferred_element_type=jnp.float32)

    @pl.when(k == pl.num_programs(1) - 1)
    def _():
        o_ref[...] = (acc_ref[...] + b_ref[...]
                      + xfull_ref[...].astype(jnp.float32)).astype(o_ref.dtype)


# --------------------------------------------------------------------------
# Wrapper
# --------------------------------------------------------------------------
def residual_linear_prep(w, b):
    """One-time parameter prep (hoisted out of the per-call forward).

    w: (D, D) in->out layout, b: (D,) or (1, D).  Casts W to bf16 / b to f32
    and pads the hidden axis to a lane-dense multiple (256 when padding is
    needed at all; untouched if D is already a multiple of 128).
    """
    D = w.shape[0]
    Dp = D if D % 128 == 0 else _round_up(D, 256)
    w_p = w.astype(jnp.bfloat16)
    b_p = jnp.reshape(b, (1, -1)).astype(jnp.float32)
    if Dp != D:
        w_p = jnp.pad(w_p, ((0, Dp - D), (0, Dp - D)))
        b_p = jnp.pad(b_p, ((0, 0), (0, Dp - D)))
    return w_p, b_p


def residual_forward(x, w_p, b_p, *, force_k_tiled=False, tk=None):
    """x: (N, D); w_p, b_p from residual_linear_prep.  Returns x @ W + b + x."""
    N, D = x.shape
    Dp = w_p.shape[0]
    x_item = jnp.dtype(x.dtype).itemsize
    o_item = x_item

    cap = _vmem_capacity_bytes()
    budget = int(cap * 0.8)                 # headroom for compiler scratch
    w_bytes = Dp * Dp * 2 + Dp * 4          # bf16 W + f32 b, single-buffered

    def pick_tm(per_row_bytes, fixed_bytes, tm_max):
        rem = max(budget - fixed_bytes, 0)
        tm = min(tm_max, rem // max(per_row_bytes, 1))
        if N > 8:
            # Keep >= 2 grid tiles so both v7x TensorCores get work.
            tm = min(tm, _round_up(-(-N // 2), 8))
        return max(8, (int(tm) // 8) * 8)

    use_resident = (not force_k_tiled) and (
        w_bytes + 2 * 8 * Dp * (x_item + o_item) <= budget)

    if use_resident:
        per_row = 2 * Dp * (x_item + o_item)        # double-buffered x + out
        tm = pick_tm(per_row, w_bytes, tm_max=512)
        need = w_bytes + tm * per_row
    else:
        if tk is None or Dp % tk != 0:
            tk = 512 if Dp % 512 == 0 else (256 if Dp % 256 == 0 else 128)
        # per-row VMEM: x K-slice(2 bufs) + x full row(2) + out(2) + f32 acc(1)
        per_row = 2 * tk * x_item + 2 * Dp * x_item + 2 * Dp * o_item + Dp * 4
        fixed = 2 * tk * Dp * 2 + Dp * 4            # streamed W tile + bias
        tm = pick_tm(per_row, fixed, tm_max=256)
        need = fixed + tm * per_row

    vmem_limit = max(min(int(cap * 0.875), need + 16 * 1024 * 1024),
                     32 * 1024 * 1024)

    Np = _round_up(N, tm)
    pad_rows, pad_cols = Np - N, Dp - D
    # Skip the extra HBM pad pass entirely when shapes are already aligned.
    if pad_rows == 0 and pad_cols == 0:
        x_p = x
    else:
        x_p = jnp.pad(x, ((0, pad_rows), (0, pad_cols)))

    cost = pl.CostEstimate(
        flops=2 * Np * Dp * Dp,
        transcendentals=0,
        bytes_accessed=Np * Dp * (x_item + o_item) + Dp * Dp * 2 + Dp * 4)

    if use_resident:
        out = pl.pallas_call(
            _residual_linear_resident_kernel,
            out_shape=jax.ShapeDtypeStruct((Np, Dp), x.dtype),
            grid_spec=pltpu.PrefetchScalarGridSpec(
                num_scalar_prefetch=0,
                grid=(Np // tm,),
                in_specs=[
                    pl.BlockSpec((tm, Dp), lambda i: (i, 0)),   # x: N-tiled
                    pl.BlockSpec((Dp, Dp), lambda i: (0, 0),    # W: resident
                                 pipeline_mode=pl.Buffered(1)),
                    pl.BlockSpec((1, Dp), lambda i: (0, 0),     # b: resident
                                 pipeline_mode=pl.Buffered(1)),
                ],
                out_specs=pl.BlockSpec((tm, Dp), lambda i: (i, 0)),
            ),
            compiler_params=pltpu.CompilerParams(
                dimension_semantics=("parallel",),
                vmem_limit_bytes=vmem_limit,
            ),
            cost_estimate=cost,
        )(x_p, w_p, b_p)
    else:
        out = pl.pallas_call(
            _residual_linear_ktiled_kernel,
            out_shape=jax.ShapeDtypeStruct((Np, Dp), x.dtype),
            grid_spec=pltpu.PrefetchScalarGridSpec(
                num_scalar_prefetch=0,
                grid=(Np // tm, Dp // tk),
                in_specs=[
                    pl.BlockSpec((tm, tk), lambda i, k: (i, k)),   # x K-slice
                    pl.BlockSpec((tk, Dp), lambda i, k: (k, 0)),   # W K-slice
                    pl.BlockSpec((tm, Dp), lambda i, k: (i, 0)),   # x (residual)
                    pl.BlockSpec((1, Dp), lambda i, k: (0, 0),     # b: resident
                                 pipeline_mode=pl.Buffered(1)),
                ],
                out_specs=pl.BlockSpec((tm, Dp), lambda i, k: (i, 0)),
                scratch_shapes=[pltpu.VMEM((tm, Dp), jnp.float32)],
            ),
            compiler_params=pltpu.CompilerParams(
                dimension_semantics=("parallel", "arbitrary"),
                vmem_limit_bytes=vmem_limit,
            ),
            cost_estimate=cost,
        )(x_p, w_p, x_p, b_p)

    if pad_rows or pad_cols:
        out = out[:N, :D]
    return out


if __name__ == "__main__":
    batch, seq, hidden = 2, 8, 32

    key = jax.random.PRNGKey(0)
    kx, kw, kb = jax.random.split(key, 3)

    x = jax.random.normal(kx, (batch, seq, hidden), dtype=jnp.float32)
    # PyTorch Linear weight is (out, in); store transposed (in, out) so the
    # kernel does x @ W directly.
    w = (jax.random.normal(kw, (hidden, hidden), dtype=jnp.float32)
         * (1.0 / jnp.sqrt(hidden)))
    b = jax.random.normal(kb, (1, hidden), dtype=jnp.float32) * 0.01

    # One-time parameter prep (bf16 cast + pad) -- amortized across calls.
    w_p, b_p = residual_linear_prep(w, b)

    x2d = x.reshape(batch * seq, hidden)                 # (tokens, hidden)

    out2d = residual_forward(x2d, w_p, b_p)              # resident-W path
    out = out2d.reshape(batch, seq, hidden)
    jax.block_until_ready(out)

    # Also exercise the K-tiled fallback path (used for large D / small VMEM).
    out2d_k = residual_forward(x2d, w_p, b_p, force_k_tiled=True, tk=128)
    jax.block_until_ready(out2d_k)

    # Reference with the same compute recipe (bf16 matmul, f32 accumulate):
    ref_bf16 = (jnp.dot(x2d.astype(jnp.bfloat16), w.astype(jnp.bfloat16),
                        preferred_element_type=jnp.float32)
                + b + x2d)
    assert jnp.allclose(out2d, ref_bf16, atol=1e-3, rtol=1e-3)
    assert jnp.allclose(out2d_k, ref_bf16, atol=1e-3, rtol=1e-3)

    # Loose sanity check against full-f32 math (bf16 matmul tolerance).
    ref_f32 = x2d @ w + b + x2d
    assert jnp.allclose(out2d, ref_f32, atol=3e-2, rtol=3e-2)

    print("KERNEL_OK")
</pallas_src>

<mosaic_0001>
module attributes {stable_mosaic.version = 11 : i64} {
  func.func @_residual_linear_resident_kernel(%arg0: i32, %arg1: memref<8x256xf32, #tpu.memory_space<vmem>>, %arg2: memref<256x256xbf16, #tpu.memory_space<vmem>>, %arg3: memref<1x256xf32, #tpu.memory_space<vmem>>, %arg4: memref<8x256xf32, #tpu.memory_space<vmem>>) attributes {dimension_semantics = [#tpu.dimension_semantics<parallel>], iteration_bounds = array<i64: 2>, scalar_prefetch = 0 : i64, scratch_operands = 0 : i64, tpu.core_type = #tpu.core_type<tc>, window_params = [{transform_indices = @transform_0, window_bounds = array<i64: 8, 256>}, {pipeline_mode = #tpu.pipeline_mode<synchronous>, transform_indices = @transform_1, window_bounds = array<i64: 256, 256>}, {pipeline_mode = #tpu.pipeline_mode<synchronous>, transform_indices = @transform_2, window_bounds = array<i64: 1, 256>}, {transform_indices = @transform_3, window_bounds = array<i64: 8, 256>}]} {
    %c0 = arith.constant 0 : index
    %c0_0 = arith.constant 0 : index
    %0 = vector.load %arg1[%c0, %c0_0] : memref<8x256xf32, #tpu.memory_space<vmem>>, vector<8x256xf32>
    %1 = arith.truncf %0 : vector<8x256xf32> to vector<8x256xbf16>
    %c0_1 = arith.constant 0 : index
    %c0_2 = arith.constant 0 : index
    %2 = vector.load %arg2[%c0_1, %c0_2] : memref<256x256xbf16, #tpu.memory_space<vmem>>, vector<256x256xbf16>
    %cst = arith.constant dense<0.000000e+00> : vector<8x256xf32>
    %3 = tpu.matmul %1, %2, %cst {dimension_numbers = #tpu.dot_dimension_numbers<[1], [0], [0], [1], [0, 0, 1, 1], [], []>} : vector<8x256xbf16>, vector<256x256xbf16>, vector<8x256xf32> -> vector<8x256xf32>
    %c0_3 = arith.constant 0 : index
    %c0_4 = arith.constant 0 : index
    %4 = vector.load %arg3[%c0_3, %c0_4] : memref<1x256xf32, #tpu.memory_space<vmem>>, vector<1x256xf32>
    %5 = vector.broadcast %4 : vector<1x256xf32> to vector<8x256xf32>
    %6 = arith.addf %3, %5 : vector<8x256xf32>
    %7 = arith.addf %6, %0 : vector<8x256xf32>
    %c0_5 = arith.constant 0 : index
    %c0_6 = arith.constant 0 : index
    %8 = vector.load %arg4[%c0_5, %c0_6] : memref<8x256xf32, #tpu.memory_space<vmem>>, vector<8x256xf32>
    tpu.vector_store %arg4[%c0_5, %c0_6], %7 {strides = array<i32>} : memref<8x256xf32, #tpu.memory_space<vmem>>, vector<8x256xf32>,
    return
  }
  func.func @transform_0(%arg0: i32) -> (i32, i32) {
    %c0_i32 = arith.constant 0 : i32
    %c0_i32_0 = arith.constant 0 : i32
    return %arg0, %c0_i32 : i32, i32
  }
  func.func @transform_1(%arg0: i32) -> (i32, i32) {
    %c0_i32 = arith.constant 0 : i32
    %c0_i32_0 = arith.constant 0 : i32
    %c0_i32_1 = arith.constant 0 : i32
    return %c0_i32, %c0_i32_0 : i32, i32
  }
  func.func @transform_2(%arg0: i32) -> (i32, i32) {
    %c0_i32 = arith.constant 0 : i32
    %c0_i32_0 = arith.constant 0 : i32
    %c0_i32_1 = arith.constant 0 : i32
    return %c0_i32, %c0_i32_0 : i32, i32
  }
  func.func @transform_3(%arg0: i32) -> (i32, i32) {
    %c0_i32 = arith.constant 0 : i32
    %c0_i32_0 = arith.constant 0 : i32
    return %arg0, %c0_i32 : i32, i32
  }
}

</mosaic_0001>

<bundles_post_ra>
// kernel: tpu_custom_call.1
= control target key start
LH: loop header
LB: loop body
LE: loop exit
PB: predicated region body
PF: predicated region fallthrough
CT: control target
= control target key end

     0   :  { %8 = vsyncpa [#allocation3], 0  ;;  %s1172_s0 = inlined_call_operand.hbm [shape: f32[16,256], index: 0, kind: input, shape index: {}]   ;;  %s1173_s1 = inlined_call_operand.hbm [shape: bf16[256,256], index: 1, kind: input, shape index: {}]   ;;  %s1174_s2 = inlined_call_operand.hbm [shape: f32[1,256], index: 2, kind: input, shape index: {}]   ;;  %s1175_s3 = inlined_call_operand.hbm [shape: f32[16,256], index: 3, kind: output, shape index: {}]  }
   0x1   :  { %10 = vsyncpa [#allocation3 + $0x1], 0 }
   0x2   :  { %11 = vsyncpa [#allocation6], 0 }
   0x3   :  { %12 = vsyncpa [#allocation4], 0 }
   0x4   :  { %14 = vsyncpa [#allocation4 + $0x1], 0  ;;  %s1019_s12 = smov 0   ;;  %s1021_s13 = smov 0  }
   0x5   :  { %s1023_s14 = smov 0   ;;  %s1025_s15 = smov 0  }
   0x6 LB: > { %s130_s18 = sshll.u32 %s1173_s1, 4  ;;  %s1043_s19 = sadd.s32 4294967295, %s993_s15   ;;  %s993_s15 = sphi %s1025_s15, %s1186_s15   ;;  %s989_s14 = sphi %s1023_s14, %s1185_s14   ;;  %s985_s13 = sphi %s1021_s13, %s1184_s13   ;;  %s981_s12 = sphi %s1019_s12, %s1183_s12   ;;  %s131_s18 = int_to_ptr.hbm [resolvable:$true] %s130_s18 }
   0x7   : > { %p585_p0 = scmp.ge.s32.totalorder %s993_s15, 1  ;;  %p41_p1 = scmp.eq.s32.totalorder %s1043_s19, 0 }
   0x8   : > { %p119_p2 = scmp.lt.s32.totalorder %s993_s15, 3  ;;  %s995_s21 = smov [#allocation5]  }
   0x9   : > { %s132_s22 = sshll.u32 %s995_s21, 4  ;;  %s145_s25 = sshll.u32 %s1174_s2, 4  ;;  %s133_s22 = int_to_ptr.vmem [resolvable:$true] %s132_s22  ;;  %s146_s25 = int_to_ptr.hbm [resolvable:$true] %s145_s25 }
   0xa   : > { %p1048_p3 = pnand %p585_p0, %p119_p2  ;;  %s996_s26 = smov [#allocation7]  }
   0xb   : > { %s147_s27 = sshll.u32 %s996_s26, 4  ;;  %s997_s28 = smov 128   ;;  %s148_s27 = int_to_ptr.vmem [resolvable:$true] %s147_s27 }
   0xc   : > { %p776_p4 = pneg %p1048_p3  ;;  %s998_s29 = smov 8  }
   0xd   : > { %s584_s30 = sadd.s32 4294967294, %s993_s15   ;;  %s1062_s4 = sadd.s32 1, %s993_s15  }
   0xe   : > { %p777_p6 = pnand %p776_p4, %p41_p1  ;;  %s24_s5 = ssub.s32 %s993_s15, %s1062_s4 }
   0xf   : > { %s27_s6 = sadd.s32 1, %s989_s14  ;;  %p25_p7 = scmp.eq.s32.totalorder %s24_s5, 0 }
  0x10   : > { %779 = dma.hbm_to_vmem [thread:$0]  (!%p777_p6), %s131_s18, 4096, %s133_s22, [#allocation6], %s997_s28, %s997_s28, %s998_s29  }
  0x11   : > { %782 = dma.hbm_to_vmem [thread:$0]  (!%p777_p6), %s146_s25, 32, %s148_s27, [#allocation6]  }
  0x12   : > { %p34_p8 = scmp.ne.s32.totalorder %s989_s14, %s985_s13  ;;  %p35_p9 = scmp.eq.s32.totalorder %s993_s15, 0 }
  0x13   : > { %p40_p10 = scmp.ne.s32.totalorder %s985_s13, %s981_s12  ;;  %p106_p13 = scmp.eq.s32.totalorder %s1043_s19, 1 }
  0x14   : > { %s1073_s7 = scalar_select %p25_p7, %s989_s14, %s27_s6  }
  0x15   : > { %p1075_p11 = por %p35_p9, %p34_p8  ;;  %p1081_p12 = por %p41_p1, %p40_p10 }
  0x16   : > { %p112_p0 = scmp.eq.s32.totalorder %s584_s30, 1  ;;  %p793_p2 = scmp.lt.s32.totalorder %s993_s15, 2 }
  0x17   : > { %s158_s10 = sand.u32 1, %s989_s14   ;;  %p1088_p4 = por %p106_p13, %p34_p8 }
  0x18   : > { %p1092_p6 = por %p112_p0, %p40_p10  ;;  %s589_s17 = sshll.u32 %s158_s10, 4 }
  0x19   : > { %s730_s18 = sshll.u32 %s993_s15, 4  ;;  %s162_s24 = scalar_lea.vmem [#allocation2], %s589_s17 }
  0x1a   : > { %s167_s23 = scalar_lea.hbm %s1172_s0, %s730_s18  ;;  %s171_s25 = sshll.u32 %s162_s24, 4  ;;  %s172_s25 = int_to_ptr.vmem [resolvable:$true] %s171_s25 }
  0x1b   : > { %s169_s26 = sshll.u32 %s167_s23, 4  ;;  %p1102_p7 = pnand %p793_p2, %p1075_p11  ;;  %s170_s26 = int_to_ptr.hbm [resolvable:$true] %s169_s26 }
  0x1c   : > { %s159_s28 = scalar_lea.sflag [#allocation3], %s158_s10  ;;  %s893_s29 = sshra.s32 %s170_s26, 4  ;;  %s894_s29 = int_to_ptr.hbm [resolvable:$true] %s893_s29 }
  0x1d   : > { %s895_s30 = scalar_lea.hbm %s894_s29, 16  ;;  %p897_p9 = pneg %p1102_p7 }
  0x1e   : > { %p896_p8 = scmp.ne.s32.totalorder %s894_s29, %s895_s30  ;;  %s900_s17 = scalar_lea.hbm %s1172_s0, 32 }
  0x1f   : > { %p901_p11 = scmp.lt.s32.totalorder %s894_s29, %s1172_s0  ;;  %p902_p0 = scmp.lt.s32.totalorder %s900_s17, %s895_s30 }
  0x20   : > { %p898_p10 = pnand %p897_p9, %p896_p8 }
  0x21   : > { %p903_p2 = por %p902_p0, %p901_p11 }
  0x22   : > { %p899_p13 = pneg %p898_p10 }
  0x24   : > { %p904_p5 = pnand %p903_p2, %p899_p13 }
  0x26   : > { %907 = shalt.err (!%p904_p5)
}
  0x27   : > { %786 = dma.hbm_to_vmem [thread:$0]  (!%p1102_p7), %s170_s26, 256, %s172_s25, %s159_s28  }
  0x28   : > { %180 = sbr.rel (%p1048_p3) target bundleno = 226 (0xe2), region = 32  ;;  %s1119_s10 = sand.u32 (!%p1048_p3), 1, %s985_s13  }
  0x29   : > { %s593_s21 = sshll.u32 (!%p1048_p3), %s1119_s10, 4  ;;  %s183_s22 = scalar_lea.sflag (!%p1048_p3), [#allocation3], %s1119_s10 }
  0x2a   : > { %s1125_s23 = scalar_lea.vmem (!%p1048_p3), [#allocation2], %s593_s21 }
  0x2d   : > { %968 = dma.done.wait (%p1081_p12), %s183_s22, 256  }
  0x2e   : > { %970 = vsyncadd (%p1081_p12), %s183_s22, 4294967040 }
  0x2f   : > { %972 = dma.done.wait (%p41_p1), [#allocation6], 4128  }
  0x30   : > { %974 = vsyncadd (%p41_p1), [#allocation6], 4294963168  ;;  %v655_v0 = vld [vmem:[#allocation5 + $0x70] sm:$0xf]  ;;  %v746_v1 = vld [vmem:[#allocation5 + $0x74] sm:$0xf0] }
  0x31   : > { %v719_v2 = vld [vmem:[#allocation5 + $0xf0] sm:$0xf]  ;;  %v656_v3 = vor.u32 %v746_v1, %v655_v0  ;;  %v762_v4 = vld [vmem:[#allocation5 + $0xf4] sm:$0xf0]  ;;  %v745_v5 = vld [vmem:[#allocation5 + $0x74] sm:$0xf] }
  0x32   : > { %v657_v6 = vld [vmem:[#allocation5 + $0x78] sm:$0xf0]  ;;  %v720_v7 = vor.u32 %v762_v4, %v719_v2  ;;  %v761_v9 = vld [vmem:[#allocation5 + $0xf4] sm:$0xf]  ;;  %v647_v11 = vld [vmem:[#allocation5 + $0x60] sm:$0xf] }
  0x33   : > { %v660_v8 = vor.u32 %v745_v5, %v657_v6  ;;  %v721_v10 = vld [vmem:[#allocation5 + $0xf8] sm:$0xf0]  ;;  %422 = vmatpush.bf16.msra.mxu0 %v656_v3  ;;  %v744_v13 = vld [vmem:[#allocation5 + $0x64] sm:$0xf0]  ;;  %v711_v14 = vld [vmem:[#allocation5 + $0xe0] sm:$0xf] }
  0x34   : > { %v724_v12 = vor.u32 %v761_v9, %v721_v10  ;;  %v760_v15 = vld [vmem:[#allocation5 + $0xe4] sm:$0xf0]  ;;  %435 = vmatpush.bf16.msra.mxu1 %v720_v7  ;;  %v648_v16 = vor.u32 %v744_v13, %v647_v11  ;;  %v743_v18 = vld [vmem:[#allocation5 + $0x64] sm:$0xf]  ;;  %v649_v19 = vld [vmem:[#allocation5 + $0x68] sm:$0xf0] }
  0x35   : > { %448 = vmatpush.bf16.msra.mxu2 %v660_v8  ;;  %v712_v17 = vor.u32 %v760_v15, %v711_v14  ;;  %v759_v20 = vld [vmem:[#allocation5 + $0xe4] sm:$0xf]  ;;  %v652_v21 = vor.u32 %v743_v18, %v649_v19  ;;  %v713_v22 = vld [vmem:[#allocation5 + $0xe8] sm:$0xf0]  ;;  %v639_v23 = vld [vmem:[#allocation5 + $0x50] sm:$0xf] }
  0x36   : > { %461 = vmatpush.bf16.msra.mxu3 %v724_v12  ;;  %v742_v24 = vld [vmem:[#allocation5 + $0x54] sm:$0xf0]  ;;  %v716_v25 = vor.u32 %v759_v20, %v713_v22  ;;  %v703_v26 = vld [vmem:[#allocation5 + $0xd0] sm:$0xf]  ;;  %v741_v28 = vld [vmem:[#allocation5 + $0x54] sm:$0xf] }
  0x37   : > { %v758_v27 = vld [vmem:[#allocation5 + $0xd4] sm:$0xf0]  ;;  %423 = vmatpush.bf16.msra.mxu0 %v648_v16  ;;  %v640_v29 = vor.u32 %v742_v24, %v639_v23  ;;  %v641_v30 = vld [vmem:[#allocation5 + $0x58] sm:$0xf0]  ;;  %v757_v31 = vld [vmem:[#allocation5 + $0xd4] sm:$0xf] }
  0x38   : > { %v705_v32 = vld [vmem:[#allocation5 + $0xd8] sm:$0xf0]  ;;  %436 = vmatpush.bf16.msra.mxu1 %v712_v17  ;;  %v704_v33 = vor.u32 %v758_v27, %v703_v26  ;;  %v644_v34 = vor.u32 %v741_v28, %v641_v30  ;;  %v631_v35 = vld [vmem:[#allocation5 + $0x40] sm:$0xf]  ;;  %v740_v36 = vld [vmem:[#allocation5 + $0x44] sm:$0xf0] }
  0x39   : > { %449 = vmatpush.bf16.msra.mxu2 %v652_v21  ;;  %v695_v37 = vld [vmem:[#allocation5 + $0xc0] sm:$0xf]  ;;  %v708_v38 = vor.u32 %v757_v31, %v705_v32  ;;  %v756_v39 = vld [vmem:[#allocation5 + $0xc4] sm:$0xf0]  ;;  %v739_v40 = vld [vmem:[#allocation5 + $0x44] sm:$0xf]  ;;  %v632_v44 = vor.u32 %v740_v36, %v631_v35 }
  0x3a   : > { %462 = vmatpush.bf16.msra.mxu3 %v716_v25  ;;  %v633_v41 = vld [vmem:[#allocation5 + $0x48] sm:$0xf0]  ;;  %v755_v42 = vld [vmem:[#allocation5 + $0xc4] sm:$0xf]  ;;  %v696_v45 = vor.u32 %v756_v39, %v695_v37  ;;  %v623_v47 = vld [vmem:[#allocation5 + $0x30] sm:$0xf] }
  0x3b   : > { %v697_v43 = vld [vmem:[#allocation5 + $0xc8] sm:$0xf0]  ;;  %424 = vmatpush.bf16.msra.mxu0 %v640_v29  ;;  %v636_v46 = vor.u32 %v739_v40, %v633_v41  ;;  %v738_v48 = vld [vmem:[#allocation5 + $0x34] sm:$0xf0]  ;;  %v687_v49 = vld [vmem:[#allocation5 + $0xb0] sm:$0xf] }
  0x3c   : > { %437 = vmatpush.bf16.msra.mxu1 %v704_v33  ;;  %v700_v50 = vor.u32 %v755_v42, %v697_v43  ;;  %v754_v51 = vld [vmem:[#allocation5 + $0xb4] sm:$0xf0]  ;;  %v737_v52 = vld [vmem:[#allocation5 + $0x34] sm:$0xf]  ;;  %v625_v53 = vld [vmem:[#allocation5 + $0x38] sm:$0xf0]  ;;  %v624_v56 = vor.u32 %v738_v48, %v623_v47 }
  0x3d   : > { %450 = vmatpush.bf16.msra.mxu2 %v644_v34  ;;  %v753_v54 = vld [vmem:[#allocation5 + $0xb4] sm:$0xf]  ;;  %v689_v55 = vld [vmem:[#allocation5 + $0xb8] sm:$0xf0]  ;;  %v688_v57 = vor.u32 %v754_v51, %v687_v49  ;;  %v628_v58 = vor.u32 %v737_v52, %v625_v53  ;;  %v615_v59 = vld [vmem:[#allocation5 + $0x20] sm:$0xf] }
  0x3e   : > { %463 = vmatpush.bf16.msra.mxu3 %v708_v38  ;;  %v736_v60 = vld [vmem:[#allocation5 + $0x24] sm:$0xf0]  ;;  %v679_v61 = vld [vmem:[#allocation5 + $0xa0] sm:$0xf]  ;;  %v692_v62 = vor.u32 %v753_v54, %v689_v55  ;;  %v735_v0 = vld [vmem:[#allocation5 + $0x24] sm:$0xf] }
  0x3f   : > { %425 = vmatpush.bf16.msra.mxu0 %v632_v44  ;;  %v752_v63 = vld [vmem:[#allocation5 + $0xa4] sm:$0xf0]  ;;  %v617_v1 = vld [vmem:[#allocation5 + $0x28] sm:$0xf0]  ;;  %v751_v2 = vld [vmem:[#allocation5 + $0xa4] sm:$0xf]  ;;  %v616_v4 = vor.u32 %v736_v60, %v615_v59 }
  0x40   : > { %438 = vmatpush.bf16.msra.mxu1 %v696_v45  ;;  %v681_v3 = vld [vmem:[#allocation5 + $0xa8] sm:$0xf0]  ;;  %v680_v5 = vor.u32 %v752_v63, %v679_v61  ;;  %v620_v6 = vor.u32 %v735_v0, %v617_v1  ;;  %v607_v7 = vld [vmem:[#allocation5 + $0x10] sm:$0xf]  ;;  %v734_v8 = vld [vmem:[#allocation5 + $0x14] sm:$0xf0] }
  0x41   : > { %451 = vmatpush.bf16.msra.mxu2 %v636_v46  ;;  %v671_v9 = vld [vmem:[#allocation5 + $0x90] sm:$0xf]  ;;  %v684_v10 = vor.u32 %v751_v2, %v681_v3  ;;  %v750_v11 = vld [vmem:[#allocation5 + $0x94] sm:$0xf0]  ;;  %v733_v12 = vld [vmem:[#allocation5 + $0x14] sm:$0xf]  ;;  %v608_v16 = vor.u32 %v734_v8, %v607_v7 }
  0x42   : > { %464 = vmatpush.bf16.msra.mxu3 %v700_v50  ;;  %v609_v13 = vld [vmem:[#allocation5 + $0x18] sm:$0xf0]  ;;  %v749_v14 = vld [vmem:[#allocation5 + $0x94] sm:$0xf]  ;;  %v672_v17 = vor.u32 %v750_v11, %v671_v9  ;;  %v599_v19 = vld [vmem:[#allocation5] sm:$0xf] }
  0x43   : > { %426 = vmatpush.bf16.msra.mxu0 %v624_v56  ;;  %v673_v15 = vld [vmem:[#allocation5 + $0x98] sm:$0xf0]  ;;  %v612_v18 = vor.u32 %v733_v12, %v609_v13  ;;  %v732_v20 = vld [vmem:[#allocation5 + $0x4] sm:$0xf0]  ;;  %v663_v21 = vld [vmem:[#allocation5 + $0x80] sm:$0xf] }
  0x44   : > { %439 = vmatpush.bf16.msra.mxu1 %v688_v57  ;;  %v676_v22 = vor.u32 %v749_v14, %v673_v15  ;;  %v748_v23 = vld [vmem:[#allocation5 + $0x84] sm:$0xf0]  ;;  %v731_v24 = vld [vmem:[#allocation5 + $0x4] sm:$0xf]  ;;  %v601_v25 = vld [vmem:[#allocation5 + $0x8] sm:$0xf0]  ;;  %v600_v28 = vor.u32 %v732_v20, %v599_v19 }
  0x45   : > { %452 = vmatpush.bf16.msra.mxu2 %v628_v58  ;;  %v747_v26 = vld [vmem:[#allocation5 + $0x84] sm:$0xf]  ;;  %v665_v27 = vld [vmem:[#allocation5 + $0x88] sm:$0xf0]  ;;  %v664_v30 = vor.u32 %v748_v23, %v663_v21  ;;  %v604_v31 = vor.u32 %v731_v24, %v601_v25  ;;  %v256_v36 = vld [vmem:[#allocation7] sm:$0x3] }
  0x46   : > { %465 = vmatpush.bf16.msra.mxu3 %v692_v62  ;;  %v220_v29 = vld [vmem:[%s1125_s23] sm:$0xff]  ;;  %v221_v32 = vld [vmem:[%s1125_s23 + $0x8] sm:$0xff]  ;;  %v668_v33 = vor.u32 %v747_v26, %v665_v27  ;;  %v258_v37 = vperm.slane %v256_v36, 0  ;;  %s763_s20 = sshll.u32 %s1043_s19, 4  ;;  %v259_v42 = vperm.slane %v256_v36, 1  ;;  %s219_s26 = scalar_lea.vmem [#allocation8], %s593_s21 }
  0x47   : > { %427 = vmatpush.bf16.msra.mxu0 %v616_v4  ;;  %v222_v34 = vpack.c.bf16 %v220_v29, %v220_v29  ;;  %v223_v35 = vpack.c.bf16 %v221_v32, %v221_v32  ;;  %s490_s25 = scalar_lea.hbm %s1175_s3, %s763_s20  ;;  %s492_s27 = sshll.u32 %s219_s26, 4  ;;  %s493_s27 = int_to_ptr.vmem [resolvable:$true] %s492_s27 }
  0x48   : > { %440 = vmatpush.bf16.msra.mxu1 %v680_v5  ;;  %s494_s28 = sshll.u32 %s490_s25, 4  ;;  %s479_s19 = scalar_lea.sflag [#allocation4], %s1119_s10  ;;  %s495_s28 = int_to_ptr.hbm [resolvable:$true] %s494_s28 }
  0x49   : > { %453 = vmatpush.bf16.msra.mxu2 %v620_v6  ;;  %s937_s29 = sshra.s32 %s495_s28, 4  ;;  %s943_s17 = scalar_lea.hbm %s1175_s3, 32  ;;  %s938_s29 = int_to_ptr.hbm [resolvable:$true] %s937_s29 }
  0x4a   : > { %466 = vmatpush.bf16.msra.mxu3 %v684_v10  ;;  %s939_s30 = scalar_lea.hbm %s938_s29, 16  ;;  %p944_p12 = scmp.lt.s32.totalorder %s938_s29, %s1175_s3 }
  0x4b   : > { %428 = vmatpush.bf16.msra.mxu0 %v608_v16  ;;  %p940_p1 = scmp.ne.s32.totalorder %s938_s29, %s939_s30  ;;  %p945_p7 = scmp.lt.s32.totalorder %s943_s17, %s939_s30 }
  0x4c   : > { %441 = vmatpush.bf16.msra.mxu1 %v672_v17 }
  0x4d   : > { %454 = vmatpush.bf16.msra.mxu2 %v612_v18  ;;  %p941_p3 = pnand %p940_p1, %p1088_p4  ;;  %p946_p8 = por %p945_p7, %p944_p12 }
  0x4e   : > { %467 = vmatpush.bf16.msra.mxu3 %v676_v22 }
  0x4f   : > { %429 = vmatpush.bf16.msra.mxu0 %v600_v28  ;;  %p942_p5 = pneg %p941_p3 }
  0x50   : > { %442 = vmatpush.bf16.msra.mxu1 %v664_v30 }
  0x51   : > { %455 = vmatpush.bf16.msra.mxu2 %v604_v31  ;;  %p947_p9 = pnand %p946_p8, %p942_p5 }
  0x52   : > { %468 = vmatpush.bf16.msra.mxu3 %v668_v33  ;;  %430 = vmatmul.bf16.vlgmr.msra.gmra.mxu0 %v222_v34 }
  0x53   : > { %443 = vmatmul.bf16.vlgmr.msra.gmra.mxu1 %v223_v35 }
  0x54   : > { %456 = vmatmul.bf16.vlgmr.msra.gmra.mxu2 %v222_v34 }
  0x55   : > { %469 = vmatmul.bf16.vlgmr.msra.gmra.mxu3 %v223_v35 }
  0xcf   : > { %v431_v38 = vpop.f32.mrf.mxu0 }
  0xd0   : > { %v432_v39 = vadd.f32 %v431_v38, %v258_v37  ;;  %v444_v40 = vpop.f32.mrf.mxu1 }
  0xd2   : > { %v445_v41 = vadd.f32 %v444_v40, %v432_v39 }
  0xd4   : > { %v474_v43 = vadd.f32 %v445_v41, %v220_v29 }
  0xd6   : > { %476 = vst [vmem:[%s219_s26] sm:$0xff] %v474_v43 }
  0xd7   : > { %v457_v44 = vpop.f32.mrf.mxu2  ;;  %v433_v47 = vpop.f32.mrf.mxu0 }
  0xd8   : > { %v458_v45 = vadd.f32 %v457_v44, %v259_v42  ;;  %v470_v46 = vpop.f32.mrf.mxu3  ;;  %v446_v48 = vpop.f32.mrf.mxu1 }
  0xda   : > { %v471_v49 = vadd.f32 %v470_v46, %v458_v45 }
  0xdc   : > { %v475_v50 = vadd.f32 %v471_v49, %v221_v32 }
  0xde   : > { %477 = vst [vmem:[%s219_s26 + $0x8] sm:$0xff] %v475_v50 }
  0xdf   : > { %v459_v51 = vpop.f32.mrf.mxu2 }
  0xe0   : > { %950 = shalt.err (!%p947_p9)
}
  0xe1   : > { %774 = dma.vmem_to_hbm [thread:$0]  (%p1088_p4), %s493_s27, 256, %s495_s28, %s479_s19   ;;  %v472_v52 = vpop.f32.mrf.mxu3 }
  0xe2 PF: > { %s506_s10 = sand.u32 1, %s981_s12   ;;  %p1182_p10 = scmp.ge.s32.totalorder %s993_s15, 2 }
  0xe3   : > { %s507_s21 = scalar_lea.sflag [#allocation4], %s506_s10 }
  0xe4   : > { %p788_p13 = pnand %p1182_p10, %p1092_p6 }
  0xe6   : > { %p789_p11 = pneg %p788_p13 }
  0xe8   : > { %976 = dma.done.wait (%p789_p11), %s507_s21, 256  }
  0xe9   : > { %978 = vsyncadd (%p789_p11), %s507_s21, 4294967040  ;;  %p17_p0 = scmp.ge.s32.totalorder %s1062_s4, 4   ;;  %s1183_s12 = smov %s985_s13 }
  0xea   : > { %s1184_s13 = smov %s989_s14  ;;  %s1185_s14 = smov %s1073_s7 }
  0xeb   : > { %s1186_s15 = smov %s1062_s4  ;;  %19 = sbr.rel (!%p17_p0) target bundleno = 6 (0x6), region = 85 }
  0xf0   :  { %513 = vsyncpa [#allocation3], 1 }
  0xf1   :  { %515 = vsyncpa [#allocation3 + $0x1], 1 }
  0xf2   :  { %516 = vsyncpa [#allocation6], 1 }
  0xf3   :  { %517 = vsyncpa [#allocation4], 1 }
  0xf4   :  { %519 = vsyncpa [#allocation4 + $0x1], 1 }

</bundles_post_ra>
